<compile_context>
chip_gen: v7x
topology: tpu7x:2x2x1
jax: 0.10.0
libtpu: 0.0.40
codegen_flags: <defaults>
</compile_context>

<pallas_src>
import functools

import jax
import jax.numpy as jnp
from jax.experimental import pallas as pl
from jax.experimental.pallas import tpu as pltpu

_LANE = 128
_MXU_MIN_K = 8           # below this contraction depth, use VPU broadcast FMAs
_TARGET_GRID_STEPS = 8   # >= 4 pipelined steps per TensorCore on a 2-TC chip


def _cdiv(a, b):
    return -(-a // b)


def _round_up(a, b):
    return _cdiv(a, b) * b


def _sublane_multiple(dtype):
    # f32 -> 8, bf16 -> 16, int8/fp8 -> 32 (second-minor block-dim constraint).
    bits = jnp.dtype(dtype).itemsize * 8
    return max(8, 256 // bits)


def _default_vmem_limit_bytes():
    # ~half of physical VMEM: 64 MiB on v5e/v6e (128 MiB), 32 MiB on v7x (64 MiB).
    try:
        cap = pltpu.get_tpu_info().vmem_capacity_bytes
    except Exception:  # pragma: no cover - conservative fallback
        cap = 64 * 1024 * 1024
    return int(max(32 * 1024 * 1024, min(96 * 1024 * 1024, cap // 2)))


def _pick_row_tile(n, tm, sublane):
    """Row tile + padded row count.

    Keep >= _TARGET_GRID_STEPS grid steps (so each of v7x's two TensorCores
    gets several steps and keeps an i+1 prefetch in flight), keep the step
    count even, and round the tile to the dtype's sublane multiple.
    """
    tm_cap = max(sublane, _round_up(_cdiv(n, _TARGET_GRID_STEPS), sublane))
    tm_eff = max(sublane, min(_round_up(tm, sublane), tm_cap))
    steps = _cdiv(n, tm_eff)
    if steps > 1 and steps % 2 == 1:
        steps += 1  # even split across the two TensorCores
    return tm_eff, steps * tm_eff


# ----------------------------------------------------------------------------
# Single SineLayer
# ----------------------------------------------------------------------------
def _sine_layer_kernel(x_ref, w_ref, b_ref, o_ref, *, use_mxu):
    # x_ref: (tm, fin)        row tile of inputs (f32 or bf16)
    # w_ref: (fin, fout_pad)  omega-scaled, pre-transposed weight (resident)
    # b_ref: (1, fout_pad)    omega-scaled bias (resident, f32)
    # o_ref: (tm, fout_pad)
    x = x_ref[...]
    w = w_ref[...]
    b = b_ref[...]

    if use_mxu:
        # Contraction dim already in place: no in-kernel transpose;
        # bf16 operands run at full MXU rate, accumulation is f32.
        z = jnp.dot(x, w, preferred_element_type=jnp.float32)
    else:
        # Tiny K (e.g. 2-D coordinates in the first layer): the MXU would be
        # ~1% utilized, so do K broadcast FMAs on the VPU instead.
        fin = w.shape[0]
        z = jnp.zeros((x.shape[0], w.shape[1]), jnp.float32)
        for k in range(fin):  # static, tiny trip count
            z = z + x[:, k:k + 1].astype(jnp.float32) * w[k:k + 1, :].astype(
                jnp.float32)

    # NOTE: jnp.sin lowers to VPU range-reduction + polynomial (no EUP sine);
    # on v7x this kernel is likely VALU-bound on the sin itself.
    o_ref[...] = jnp.sin(z + b).astype(o_ref.dtype)


def sine_layer_forward(
    x,
    weight,
    bias,
    *,
    omega_0=30.0,
    is_first=False,
    scale_by_omega=True,
    tm=2048,
    storage_dtype="auto",
    out_dtype=None,
    vmem_limit_bytes=None,
):
    """Pallas implementation of SineLayer.forward (period == 0 path).

    Set scale_by_omega=False for the `period != 0 and is_first` path
    (sin(linear(x)) without the omega_0 scale).

    storage_dtype="auto": bf16 for x/W on the hidden-layer MXU path, f32 for
    the first layer / tiny-K path.  out_dtype defaults to x.dtype (pass
    jnp.bfloat16 to halve output writeback bytes on mem-bound v5e/v6e).
    """
    N, fin = x.shape
    fout, fin_w = weight.shape
    assert fin == fin_w

    out_dtype = x.dtype if out_dtype is None else jnp.dtype(out_dtype)
    scale = float(omega_0) if scale_by_omega else 1.0
    use_mxu = fin >= _MXU_MIN_K

    if storage_dtype == "auto":
        storage_dtype = jnp.bfloat16 if (use_mxu and not is_first) else jnp.float32
    storage_dtype = jnp.dtype(storage_dtype)

    # Fold omega_0 into the parameters once (amortized over N) and
    # pre-transpose the weight so the kernel never transposes.
    w_t = (scale * weight.astype(jnp.float32)).T        # (fin, fout)
    b_s = (scale * bias.astype(jnp.float32)).reshape(1, fout)

    # Lane-dense output: pad out_features to a multiple of 128 so stores are
    # full vregs (no vst.msk); padded columns give sin(0)=0 and are sliced off.
    fout_pad = _round_up(fout, _LANE)
    if fout_pad != fout:
        w_t = jnp.pad(w_t, ((0, 0), (0, fout_pad - fout)))
        b_s = jnp.pad(b_s, ((0, 0), (0, fout_pad - fout)))

    x_p = x.astype(storage_dtype)
    w_t = w_t.astype(storage_dtype)
    # bias stays f32: added after the f32 accumulation.

    sublane = max(_sublane_multiple(storage_dtype), _sublane_multiple(out_dtype))
    tm_eff, n_pad = _pick_row_tile(N, tm, sublane)
    if n_pad != N:
        x_p = jnp.pad(x_p, ((0, n_pad - N), (0, 0)))

    if vmem_limit_bytes is None:
        vmem_limit_bytes = _default_vmem_limit_bytes()

    kernel = functools.partial(_sine_layer_kernel, use_mxu=use_mxu)

    out = pl.pallas_call(
        kernel,
        out_shape=jax.ShapeDtypeStruct((n_pad, fout_pad), out_dtype),
        grid=(n_pad // tm_eff,),
        in_specs=[
            # row tile of the input coordinates
            pl.BlockSpec((tm_eff, fin), lambda i: (i, 0)),
            # weight / bias: constant index_map -> resident; single-buffered
            # (no point double-buffering a block whose index never changes).
            pl.BlockSpec((fin, fout_pad), lambda i: (0, 0),
                         pipeline_mode=pl.Buffered(1)),
            pl.BlockSpec((1, fout_pad), lambda i: (0, 0),
                         pipeline_mode=pl.Buffered(1)),
        ],
        out_specs=pl.BlockSpec((tm_eff, fout_pad), lambda i: (i, 0)),
        compiler_params=pltpu.CompilerParams(
            dimension_semantics=("parallel",),
            vmem_limit_bytes=vmem_limit_bytes,
        ),
    )(x_p, w_t, b_s)

    # Single-layer API keeps the exact output shape.  For stacks, use
    # siren_stack_forward below, which avoids this per-layer pad/slice
    # round-trip entirely.
    return out[:N, :fout]


# ----------------------------------------------------------------------------
# Fused stack of SineLayers (one pallas_call; activations never touch HBM)
# ----------------------------------------------------------------------------
def _siren_stack_kernel(x_ref, *rest, num_layers, first_uses_mxu, mm_dtype):
    w_refs = rest[0:2 * num_layers:2]
    b_refs = rest[1:2 * num_layers:2]
    o_ref = rest[2 * num_layers]

    h = x_ref[...]
    for l in range(num_layers):
        w = w_refs[l][...]
        b = b_refs[l][...]
        if l == 0 and not first_uses_mxu:
            fin = w.shape[0]
            z = jnp.zeros((h.shape[0], w.shape[1]), jnp.float32)
            for k in range(fin):  # static, tiny trip count
                z = z + h[:, k:k + 1].astype(jnp.float32) * w[k:k + 1, :].astype(
                    jnp.float32)
        else:
            z = jnp.dot(h, w, preferred_element_type=jnp.float32)
        a = jnp.sin(z + b)
        # Intermediate activations stay on-chip; cast to bf16 only as the
        # operand of the next (bf16) matmul.
        h = a.astype(mm_dtype) if l + 1 < num_layers else a
    o_ref[...] = h.astype(o_ref.dtype)


def siren_stack_forward(
    x,
    params,
    *,
    omega_0=30.0,
    tm=2048,
    hidden_dtype=jnp.bfloat16,
    out_dtype=None,
    vmem_limit_bytes=None,
):
    """Fused forward through a list of SineLayers [(W, b), ...] in ONE pallas_call.

    All omega-folded, pre-transposed, lane-padded weights are resident in VMEM
    (constant index_map, single-buffered); the (tm, width) activation tile
    stays on-chip between layers, so k layers cost one activation read and one
    write instead of k HBM round-trips plus per-layer pad/slice copies.
    The first layer's weights stay f32 (large sin argument); hidden matmuls
    run in `hidden_dtype` (bf16 by default) with f32 accumulation.
    """
    N, fin0 = x.shape
    num_layers = len(params)
    assert num_layers >= 1
    out_dtype = x.dtype if out_dtype is None else jnp.dtype(out_dtype)
    hidden_dtype = jnp.dtype(hidden_dtype)
    scale = float(omega_0)

    ws, bs = [], []
    fin_pad = fin0
    for l, (w, b) in enumerate(params):
        fout, fin = w.shape
        assert fin == (fin0 if l == 0 else params[l - 1][0].shape[0])
        fout_pad = _round_up(fout, _LANE)
        w_t = (scale * w.astype(jnp.float32)).T                 # (fin, fout)
        b_s = (scale * b.astype(jnp.float32)).reshape(1, fout)
        # zero-pad: extra input rows multiply zero activations, extra output
        # columns give sin(0)=0 and are killed by the next layer's zero rows.
        w_t = jnp.pad(w_t, ((0, fin_pad - fin), (0, fout_pad - fout)))
        b_s = jnp.pad(b_s, ((0, 0), (0, fout_pad - fout)))
        if l > 0:
            w_t = w_t.astype(hidden_dtype)
        ws.append(w_t)
        bs.append(b_s)
        fin_pad = fout_pad
    fout_last = params[-1][0].shape[0]
    fout_last_pad = fin_pad

    first_uses_mxu = fin0 >= _MXU_MIN_K

    sublane = max(_sublane_multiple(x.dtype), _sublane_multiple(out_dtype))
    tm_eff, n_pad = _pick_row_tile(N, tm, sublane)
    x_p = x if n_pad == N else jnp.pad(x, ((0, n_pad - N), (0, 0)))

    if vmem_limit_bytes is None:
        vmem_limit_bytes = _default_vmem_limit_bytes()

    kernel = functools.partial(
        _siren_stack_kernel,
        num_layers=num_layers,
        first_uses_mxu=first_uses_mxu,
        mm_dtype=hidden_dtype,
    )

    param_specs = []
    operands = []
    for w_t, b_s in zip(ws, bs):
        param_specs.append(
            pl.BlockSpec(w_t.shape, lambda i: (0, 0), pipeline_mode=pl.Buffered(1)))
        param_specs.append(
            pl.BlockSpec(b_s.shape, lambda i: (0, 0), pipeline_mode=pl.Buffered(1)))
        operands += [w_t, b_s]

    out = pl.pallas_call(
        kernel,
        out_shape=jax.ShapeDtypeStruct((n_pad, fout_last_pad), out_dtype),
        grid=(n_pad // tm_eff,),
        in_specs=[pl.BlockSpec((tm_eff, fin0), lambda i: (i, 0))] + param_specs,
        out_specs=pl.BlockSpec((tm_eff, fout_last_pad), lambda i: (i, 0)),
        compiler_params=pltpu.CompilerParams(
            dimension_semantics=("parallel",),
            vmem_limit_bytes=vmem_limit_bytes,
        ),
    )(x_p, *operands)

    return out[:N, :fout_last]


# ----------------------------------------------------------------------------
# Parameter init mirroring SineLayer.init_weights (period == 0)
# ----------------------------------------------------------------------------
def init_sine_layer_params(key, in_features, out_features, *, is_first, omega_0):
    kw, kb = jax.random.split(key)
    if is_first:
        bound_w = 1.0
    else:
        bound_w = float(jnp.sqrt(6.0 / in_features) / omega_0)
    weight = jax.random.uniform(
        kw, (out_features, in_features), jnp.float32, -bound_w, bound_w)
    # nn.Linear default bias init: U(-1/sqrt(in_features), 1/sqrt(in_features))
    bound_b = 1.0 / float(jnp.sqrt(in_features))
    bias = jax.random.uniform(kb, (out_features,), jnp.float32, -bound_b, bound_b)
    return weight, bias


if __name__ == "__main__":
    key = jax.random.PRNGKey(0)
    k1, k2, k3, kx1, kx2 = jax.random.split(key, 5)
    omega_0 = 30.0

    # --- First SIREN layer: 2-D coordinates -> 32 features.
    #     VPU-FMA path, f32 (auto), ragged N exercises row padding. ---
    w1, b1 = init_sine_layer_params(k1, 2, 32, is_first=True, omega_0=omega_0)
    x1 = jax.random.uniform(kx1, (120, 2), jnp.float32, -1.0, 1.0)
    y1 = jax.block_until_ready(
        sine_layer_forward(x1, w1, b1, omega_0=omega_0, is_first=True))
    ref1 = jnp.sin(omega_0 * (x1 @ w1.T + b1[None, :]))
    assert y1.shape == ref1.shape
    assert jnp.allclose(y1, ref1, atol=1e-4, rtol=1e-4)

    # --- Hidden SIREN layer: 32 -> 32, MXU path, default bf16 storage. ---
    w2, b2 = init_sine_layer_params(k2, 32, 32, is_first=False, omega_0=omega_0)
    x2 = jax.random.uniform(kx2, (200, 32), jnp.float32, -1.0, 1.0)
    ref2 = jnp.sin(omega_0 * (x2 @ w2.T + b2[None, :]))
    y2 = jax.block_until_ready(sine_layer_forward(x2, w2, b2, omega_0=omega_0))
    assert y2.shape == ref2.shape
    assert jnp.allclose(y2, ref2, atol=5e-2)

    # --- Same hidden layer forced to f32 storage: tight tolerance. ---
    y2f = jax.block_until_ready(
        sine_layer_forward(x2, w2, b2, omega_0=omega_0,
                           storage_dtype=jnp.float32))
    assert jnp.allclose(y2f, ref2, atol=1e-4, rtol=1e-4)

    # --- Fused 3-layer SIREN stack (2 -> 32 -> 32 -> 32) in one pallas_call;
    #     intermediate activations never leave VMEM. ---
    w3, b3 = init_sine_layer_params(k3, 32, 32, is_first=False, omega_0=omega_0)
    stack = [(w1, b1), (w2, b2), (w3, b3)]
    y3 = jax.block_until_ready(siren_stack_forward(x1, stack, omega_0=omega_0))
    h = x1
    for w, b in stack:
        h = jnp.sin(omega_0 * (h @ w.T + b[None, :]))
    assert y3.shape == h.shape
    assert jnp.allclose(y3, h, atol=1e-1)

    # TODO(synk): the periodic-weight init path (period != 0) is host-side
    # numpy frequency sampling (parameter init, not forward compute); only the
    # forward pass is ported.

    print("KERNEL_OK")
</pallas_src>

<mosaic_0001>
module attributes {stable_mosaic.version = 11 : i64} {
  func.func @_sine_layer_kernel(%arg0: i32, %arg1: memref<16x2xf32, #tpu.memory_space<vmem>>, %arg2: memref<2x128xf32, #tpu.memory_space<vmem>>, %arg3: memref<1x128xf32, #tpu.memory_space<vmem>>, %arg4: memref<16x128xf32, #tpu.memory_space<vmem>>) attributes {dimension_semantics = [#tpu.dimension_semantics<parallel>], iteration_bounds = array<i64: 8>, scalar_prefetch = 0 : i64, scratch_operands = 0 : i64, tpu.core_type = #tpu.core_type<tc>, window_params = [{transform_indices = @transform_0, window_bounds = array<i64: 16, 2>}, {pipeline_mode = #tpu.pipeline_mode<synchronous>, transform_indices = @transform_1, window_bounds = array<i64: 2, 128>}, {pipeline_mode = #tpu.pipeline_mode<synchronous>, transform_indices = @transform_2, window_bounds = array<i64: 1, 128>}, {transform_indices = @transform_3, window_bounds = array<i64: 16, 128>}]} {
    %c0 = arith.constant 0 : index
    %c0_0 = arith.constant 0 : index
    %0 = vector.load %arg1[%c0, %c0_0] : memref<16x2xf32, #tpu.memory_space<vmem>>, vector<16x2xf32>
    %c0_1 = arith.constant 0 : index
    %c0_2 = arith.constant 0 : index
    %1 = vector.load %arg2[%c0_1, %c0_2] : memref<2x128xf32, #tpu.memory_space<vmem>>, vector<2x128xf32>
    %c0_3 = arith.constant 0 : index
    %c0_4 = arith.constant 0 : index
    %2 = vector.load %arg3[%c0_3, %c0_4] : memref<1x128xf32, #tpu.memory_space<vmem>>, vector<1x128xf32>
    %cst = arith.constant 0.000000e+00 : f32
    %3 = vector.broadcast %cst : f32 to vector<16x128xf32>
    %4 = vector.extract_strided_slice %0 {offsets = [0, 0], sizes = [16, 1], strides = [1, 1]} : vector<16x2xf32> to vector<16x1xf32>
    %5 = vector.extract_strided_slice %1 {offsets = [0, 0], sizes = [1, 128], strides = [1, 1]} : vector<2x128xf32> to vector<1x128xf32>
    %6 = vector.broadcast %4 : vector<16x1xf32> to vector<16x128xf32>
    %7 = vector.broadcast %5 : vector<1x128xf32> to vector<16x128xf32>
    %8 = arith.mulf %6, %7 : vector<16x128xf32>
    %9 = arith.addf %3, %8 : vector<16x128xf32>
    %10 = vector.extract_strided_slice %0 {offsets = [0, 1], sizes = [16, 1], strides = [1, 1]} : vector<16x2xf32> to vector<16x1xf32>
    %11 = vector.extract_strided_slice %1 {offsets = [1, 0], sizes = [1, 128], strides = [1, 1]} : vector<2x128xf32> to vector<1x128xf32>
    %12 = vector.broadcast %10 : vector<16x1xf32> to vector<16x128xf32>
    %13 = vector.broadcast %11 : vector<1x128xf32> to vector<16x128xf32>
    %14 = arith.mulf %12, %13 : vector<16x128xf32>
    %15 = arith.addf %9, %14 : vector<16x128xf32>
    %16 = vector.broadcast %2 : vector<1x128xf32> to vector<16x128xf32>
    %17 = arith.addf %15, %16 : vector<16x128xf32>
    %18 = math.sin %17 : vector<16x128xf32>
    %c0_5 = arith.constant 0 : index
    %c0_6 = arith.constant 0 : index
    %19 = vector.load %arg4[%c0_5, %c0_6] : memref<16x128xf32, #tpu.memory_space<vmem>>, vector<16x128xf32>
    tpu.vector_store %arg4[%c0_5, %c0_6], %18 {strides = array<i32>} : memref<16x128xf32, #tpu.memory_space<vmem>>, vector<16x128xf32>,
    return
  }
  func.func @transform_0(%arg0: i32) -> (i32, i32) {
    %c0_i32 = arith.constant 0 : i32
    %c0_i32_0 = arith.constant 0 : i32
    return %arg0, %c0_i32 : i32, i32
  }
  func.func @transform_1(%arg0: i32) -> (i32, i32) {
    %c0_i32 = arith.constant 0 : i32
    %c0_i32_0 = arith.constant 0 : i32
    %c0_i32_1 = arith.constant 0 : i32
    return %c0_i32, %c0_i32_0 : i32, i32
  }
  func.func @transform_2(%arg0: i32) -> (i32, i32) {
    %c0_i32 = arith.constant 0 : i32
    %c0_i32_0 = arith.constant 0 : i32
    %c0_i32_1 = arith.constant 0 : i32
    return %c0_i32, %c0_i32_0 : i32, i32
  }
  func.func @transform_3(%arg0: i32) -> (i32, i32) {
    %c0_i32 = arith.constant 0 : i32
    %c0_i32_0 = arith.constant 0 : i32
    return %arg0, %c0_i32 : i32, i32
  }
}

</mosaic_0001>

<bundles_post_ra>
// kernel: tpu_custom_call.1
= control target key start
LH: loop header
LB: loop body
LE: loop exit
PB: predicated region body
PF: predicated region fallthrough
CT: control target
= control target key end

     0   :  { %8 = vsyncpa [#allocation3], 0  ;;  %s869_s0 = inlined_call_operand.vmem [shape: f32[128,2], index: 0, kind: input, shape index: {}]   ;;  %s870_s1 = inlined_call_operand.vmem [shape: f32[2,128], index: 1, kind: input, shape index: {}]   ;;  %s871_s2 = inlined_call_operand.vmem [shape: f32[1,128], index: 2, kind: input, shape index: {}]   ;;  %s872_s3 = inlined_call_operand.hbm [shape: f32[128,128], index: 3, kind: output, shape index: {}]  }
   0x1   :  { %10 = vsyncpa [#allocation3 + $0x1], 0  ;;  %s689_s12 = smov 0   ;;  %s691_s13 = smov 0  }
   0x2   :  { %s693_s14 = smov 0   ;;  %s695_s15 = smov 0  }
   0x3 LB: > { %s710_s16 = sadd.s32 4294967295, %s656_s15   ;;  %s504_s17 = sadd.s32 4294967294, %s656_s15   ;;  %s656_s15 = sphi %s695_s15, %s880_s15   ;;  %s652_s14 = sphi %s693_s14, %s879_s14   ;;  %s648_s13 = sphi %s691_s13, %s878_s13   ;;  %s644_s12 = sphi %s689_s12, %s877_s12  }
   0x4   : > { %s714_s18 = sadd.s32 1, %s656_s15   ;;  %s91_s19 = sadd.s32 1, %s652_s14 }
   0x5   : > { %s88_s20 = ssub.s32 %s656_s15, %s714_s18  ;;  %p101_p0 = scmp.ne.s32.totalorder %s652_s14, %s648_s13 }
   0x6   : > { %p89_p1 = scmp.eq.s32.totalorder %s88_s20, 0  ;;  %p102_p2 = scmp.eq.s32.totalorder %s710_s16, 7 }
   0x7   : > { %p107_p3 = scmp.ne.s32.totalorder %s648_s13, %s644_s12  ;;  %p108_p4 = scmp.eq.s32.totalorder %s504_s17, 7 }
   0x8   : > { %s725_s21 = scalar_select %p89_p1, %s652_s14, %s91_s19  }
   0x9   : > { %p727_p5 = por %p102_p2, %p101_p0  ;;  %p731_p6 = por %p108_p4, %p107_p3 }
   0xa   : > { %p507_p7 = scmp.ge.s32.totalorder %s656_s15, 1  ;;  %p141_p8 = scmp.lt.s32.totalorder %s656_s15, 9 }
   0xc   : > { %p142_p9 = pnand %p507_p7, %p141_p8 }
   0xd   : > { %s509_s24 = sshll.u32 (!%p142_p9), %s710_s16, 1  ;;  %v658_v0 = vmov (!%p142_p9), 1   ;;  %v659_v1 = vmov (!%p142_p9), 0   ;;  %v186_v4 = vlaneseq (!%p142_p9)  ;;  %v174_v8 = vld [vmem:[%s870_s1] sm:$0x3] (!%p142_p9)  ;;  %s162_s6 = sand.u32 (!%p142_p9), 1, %s648_s13  }
   0xe   : > { %145 = sbr.rel (%p142_p9) target bundleno = 264 (0x108), region = 32  ;;  %584 = vset.pattern.permute.xlu1 (!%p142_p9), %v658_v0  ;;  %583 = vset.pattern.permute.xlu0 (!%p142_p9), %v659_v1  ;;  %p166_p10 = scmp.lt.s32.totalorder (!%p142_p9), %s509_s24, 15  ;;  %v511_v15 = vld [vmem:[%s871_s2] ss:$0 sm:$0xff] (!%p142_p9)  ;;  %v660_v40 = vmov (!%p142_p9), 683565275  }
   0xf   : > { %v187_v5 = vshrl.u32 (!%p142_p9), %v186_v4, 7  ;;  %v661_v44 = vmov (!%p142_p9), 2475754826   ;;  %v662_v46 = vmov (!%p142_p9), 2131351028   ;;  %s508_s7 = sshll.u32 (!%p142_p9), %s162_s6, 4 }
  0x10   : > { %v663_v48 = vmov (!%p142_p9), 2102212464   ;;  %v664_v50 = vmov (!%p142_p9), 920167782   ;;  %v665_v57 = vmov (!%p142_p9), 1326507024  }
  0x11   : > { %v204_v6 = vsub.s32 (!%p142_p9), 1, %v187_v5  ;;  %v188_v7 = vsub.s32 (!%p142_p9), 0, %v187_v5  ;;  %s164_s8 = scalar_lea.vmem (!%p142_p9), [#allocation2], %s508_s7  ;;  %s525_s9 = sshll.u32 (!%p142_p9), %s710_s16, 8 }
  0x12   : > { %s442_s10 = sshll.u32 (!%p142_p9), %s164_s8, 4  ;;  %s821_s19 = scalar_lea.hbm (!%p142_p9), %s872_s3, %s525_s9  ;;  %s823_s10 = int_to_ptr.vmem [resolvable:$true] %s442_s10 }
  0x13   : > { %v205_v9 = vrot.slane (!%p142_p9), %v174_v8, %v204_v6  ;;  %v189_v10 = vrot.slane (!%p142_p9), %v174_v8, %v188_v7  ;;  %s828_s16 = scalar_lea.sflag (!%p142_p9), [#allocation3], %s162_s6  ;;  %s594_s20 = scalar_lea.vmem (!%p142_p9), %s823_s10, 256 }
  0x14   : > { %p595_p11 = scmp.ne.s32.totalorder (!%p142_p9), %s823_s10, %s594_s20 }
  0x15   : > { %s882_s24 = smov (!%p166_p10, %s509_s24), 15 }
  0x16   : > { %s510_s25 = sshll.u32 %s882_s24, 3  ;;  %p596_p12 = pnand %p595_p11, %p727_p5 }
  0x17   : > { %s169_s28 = scalar_lea.vmem %s869_s0, %s510_s25  ;;  %s666_s24 = smov [#allocation2]  }
  0x18   : > { %v172_v2 = vld [vmem:[%s169_s28] sm:$0xff]  ;;  %v173_v3 = vld [vmem:[%s169_s28 + $0x8] sm:$0xff]  ;;  %p597_p13 = pneg %p596_p12  ;;  %s598_s25 = sshll.u32 %s666_s24, 4  ;;  %s599_s25 = int_to_ptr.vmem [resolvable:$false] %s598_s25 }
  0x19   : > { %195 = vperm.xlu1 %584, %v172_v2   ;;  %178 = vperm.xlu0 %583, %v172_v2   ;;  %s600_s26 = scalar_lea.vmem %s599_s25, 512  ;;  %p601_p0 = scmp.lt.s32.totalorder %s823_s10, %s599_s25 }
  0x1a   : > { %p602_p1 = scmp.lt.s32.totalorder %s600_s26, %s594_s20 }
  0x1c   : > { %p603_p2 = por %p602_p1, %p601_p0 }
  0x1d   : > { %199 = vperm.xlu1 %584, %v173_v3   ;;  %183 = vperm.xlu0 %583, %v173_v3  }
  0x1e   : > { %p604_p3 = pnand %p603_p2, %p597_p13 }
  0x21   : > { %585 = vset.pattern.permute.xlu0 %v658_v0 }
  0x98   : > { %v196_v11 = vpop.permute.xlu1 %195  ;;  %v179_v12 = vpop.permute.xlu0 %178 }
  0x99   : > { %v206_v13 = vmul.f32 %v205_v9, %v196_v11  ;;  %v190_v14 = vmul.f32 %v189_v10, %v179_v12 }
  0x9b   : > { %v208_v16 = vadd.f32 %v206_v13, %v190_v14 }
  0x9c   : > { %v200_v17 = vpop.permute.xlu1 %199  ;;  %v184_v18 = vpop.permute.xlu0 %183 }
  0x9d   : > { %v747_v19 = vadd.f32 %v511_v15, %v208_v16  ;;  %v207_v20 = vmul.f32 %v205_v9, %v200_v17  ;;  %v191_v21 = vmul.f32 %v189_v10, %v184_v18 }
  0x9f   : > { %v218_v22 = vand.u32 2147483647, %v747_v19  ;;  %v221_v23 = vand.u32 2139095040, %v747_v19  ;;  %v209_v24 = vadd.f32 %v207_v20, %v191_v21  ;;  %vm220_vm14 = vcmp.lt.s32.totalorder %v747_v19, 0 }
  0xa1   : > { %v222_v25 = vshrl.u32 %v221_v23, 23  ;;  %v751_v26 = vadd.f32 %v511_v15, %v209_v24  ;;  %v225_v27 = vand.u32 8388607, %v218_v22  ;;  %vm219_vm15 = vcmp.le.f32.partialorder %v218_v22, 0.7853982 }
  0xa3   : > { %v512_v28 = vadd.s32 4294967169, %v222_v25  ;;  %v325_v29 = vand.u32 2139095040, %v751_v26  ;;  %v226_v31 = vor.u32 8388608, %v225_v27  ;;  %v322_v33 = vand.u32 2147483647, %v751_v26 }
  0xa5   : > { %v228_v30 = vadd.s32 1, %v512_v28  ;;  %v326_v32 = vshrl.u32 %v325_v29, 23  ;;  %v757_v38 = vshll.u32 %v226_v31, 8  ;;  %v329_v42 = vand.u32 8388607, %v322_v33 }
  0xa7   : > { %vm229_vm0 = vcmp.gt.s32.totalorder %v228_v30, 0  ;;  %v516_v35 = vadd.s32 4294967169, %v326_v32  ;;  %v330_v8 = vor.u32 8388608, %v329_v42 }
  0xa8   : > { %v230_v34 = vsel %vm229_vm0, %v228_v30, 0  ;;  %vm324_vm0 = vcmp.lt.s32.totalorder %v751_v26, 0 }
  0xa9   : > { %v231_v36 = vshrl.u32 %v230_v34, 5  ;;  %v232_v37 = vand.u32 31, %v230_v34  ;;  %v332_v43 = vadd.s32 1, %v516_v35  ;;  %v370_v23 = vshll.u32 %v330_v8, 8 }
  0xab   : > { %v233_v39 = vsub.s32 32, %v232_v37  ;;  %v235_v41 = vshll.u32 %v660_v40, %v232_v37  ;;  %v238_v45 = vshll.u32 %v661_v44, %v232_v37  ;;  %v241_v47 = vshll.u32 %v662_v46, %v232_v37 }
  0xac   : > { %v244_v49 = vshll.u32 %v663_v48, %v232_v37  ;;  %v247_v51 = vshll.u32 %v664_v50, %v232_v37  ;;  %vm250_vm1 = vcmp.lt.s32.totalorder %v231_v36, 1  ;;  %vm252_vm2 = vcmp.lt.s32.totalorder %v231_v36, 3 }
  0xad   : > { %v236_v52 = vshrl.u32 %v661_v44, %v233_v39  ;;  %v239_v53 = vshrl.u32 %v662_v46, %v233_v39  ;;  %v242_v54 = vshrl.u32 %v663_v48, %v233_v39  ;;  %v234_v55 = vshrl.u32 %v660_v40, %v233_v39 }
  0xae   : > { %v245_v56 = vshrl.u32 %v664_v50, %v233_v39  ;;  %v248_v58 = vshrl.u32 %v665_v57, %v233_v39  ;;  %vm333_vm3 = vcmp.gt.s32.totalorder %v332_v43, 0  ;;  %vm253_vm4 = vcmp.lt.s32.totalorder %v231_v36, 4 }
  0xaf   : > { %v237_v59 = vor.u32 %v236_v52, %v235_v41  ;;  %v240_v60 = vor.u32 %v239_v53, %v238_v45  ;;  %v243_v61 = vor.u32 %v242_v54, %v241_v47  ;;  %v334_v0 = vsel %vm333_vm3, %v332_v43, 0 }
  0xb0   : > { %v246_v62 = vor.u32 %v245_v56, %v244_v49  ;;  %v249_v63 = vor.u32 %v248_v58, %v247_v51  ;;  %vm251_vm5 = vcmp.lt.s32.totalorder %v231_v36, 2  ;;  %v336_v11 = vand.u32 31, %v334_v0 }
  0xb1   : > { %v254_v1 = vsel %vm250_vm1, %v234_v55, %v237_v59  ;;  %v255_v2 = vsel %vm253_vm4, %v243_v61, 2102212464  ;;  %v258_v3 = vsel %vm250_vm1, %v237_v59, %v240_v60  ;;  %v262_v4 = vsel %vm250_vm1, %v240_v60, %v243_v61 }
  0xb2   : > { %v256_v5 = vsel %vm252_vm2, %v240_v60, %v255_v2  ;;  %v259_v6 = vsel %vm253_vm4, %v246_v62, 920167782  ;;  %v263_v7 = vsel %vm253_vm4, %v249_v63, 1326507024  ;;  %v335_v20 = vshrl.u32 %v334_v0, 5 }
  0xb3   : > { %v260_v9 = vsel %vm252_vm2, %v243_v61, %v259_v6  ;;  %v264_v10 = vsel %vm252_vm2, %v246_v62, %v263_v7  ;;  %v257_v12 = vsel %vm251_vm5, %v254_v1, %v256_v5  ;;  %v337_v21 = vsub.s32 32, %v336_v11 }
  0xb4   : > { %v261_v13 = vsel %vm251_vm5, %v258_v3, %v260_v9  ;;  %v265_v14 = vsel %vm251_vm5, %v262_v4, %v264_v10  ;;  %v273_v24 = vmul.u32 %v757_v38, %v257_v12  ;;  %v339_v25 = vshll.u32 %v660_v40, %v336_v11 }
  0xb5   : > { %v770_v15 = vmul.u32.u64.low %v757_v38, %v265_v14  ;;  %v771_v16 = vmul.u32.u64.high %v757_v38, %v265_v14, %v770_v15  ;;  %v774_v17 = vmul.u32.u64.low %v757_v38, %v261_v13  ;;  %v775_v18 = vmul.u32.u64.high %v757_v38, %v261_v13, %v774_v17 }
  0xb6   : > { %v342_v27 = vshll.u32 %v661_v44, %v336_v11  ;;  %v345_v28 = vshll.u32 %v662_v46, %v336_v11  ;;  %v340_v29 = vshrl.u32 %v661_v44, %v337_v21  ;;  %v343_v30 = vshrl.u32 %v662_v46, %v337_v21 }
  0xb7   : > { %v346_v31 = vshrl.u32 %v663_v48, %v337_v21  ;;  %v348_v32 = vshll.u32 %v663_v48, %v336_v11  ;;  %vm275_vm6 = vc.u32 %v771_v16, %v774_v17  ;;  %v276_v34 = vadd.s32 1, %v775_v18 }
  0xb8   : > { %v349_v35 = vshrl.u32 %v664_v50, %v337_v21  ;;  %v351_v36 = vshll.u32 %v664_v50, %v336_v11  ;;  %v341_v37 = vor.u32 %v340_v29, %v339_v25  ;;  %v344_v39 = vor.u32 %v343_v30, %v342_v27 }
  0xb9   : > { %v347_v41 = vor.u32 %v346_v31, %v345_v28  ;;  %v352_v42 = vshrl.u32 %v665_v57, %v337_v21  ;;  %v277_v38 = vsel %vm275_vm6, %v276_v34, %v775_v18  ;;  %vm354_vm7 = vcmp.lt.s32.totalorder %v335_v20, 1 }
  0xba   : > { %v350_v43 = vor.u32 %v349_v35, %v348_v32  ;;  %vm357_vm8 = vcmp.lt.s32.totalorder %v335_v20, 4  ;;  %v278_v44 = vadd.s32 %v277_v38, %v273_v24  ;;  %vm356_vm9 = vcmp.lt.s32.totalorder %v335_v20, 3 }
  0xbb   : > { %v353_v45 = vor.u32 %v352_v42, %v351_v36  ;;  %v359_v46 = vsel %vm357_vm8, %v347_v41, 2102212464  ;;  %v338_v47 = vshrl.u32 %v660_v40, %v337_v21  ;;  %v362_v48 = vsel %vm354_vm7, %v341_v37, %v344_v39 }
  0xbc   : > { %v363_v49 = vsel %vm357_vm8, %v350_v43, 920167782  ;;  %v366_v51 = vsel %vm354_vm7, %v344_v39, %v347_v41  ;;  %v279_v52 = vadd.s32 536870912, %v278_v44  ;;  %vm355_vm10 = vcmp.lt.s32.totalorder %v335_v20, 2 }
  0xbd   : > { %v364_v50 = vsel %vm356_vm9, %v347_v41, %v363_v49  ;;  %v367_v53 = vsel %vm357_vm8, %v353_v45, 1326507024  ;;  %v358_v54 = vsel %vm354_vm7, %v338_v47, %v341_v37  ;;  %v360_v55 = vsel %vm356_vm9, %v344_v39, %v359_v46 }
  0xbe   : > { %v365_v56 = vsel %vm355_vm10, %v362_v48, %v364_v50  ;;  %v368_v57 = vsel %vm356_vm9, %v350_v43, %v367_v53  ;;  %v280_v58 = vshrl.u32 %v279_v52, 30  ;;  %v361_v0 = vsel %vm355_vm10, %v358_v54, %v360_v55 }
  0xbf   : > { %v369_v59 = vsel %vm355_vm10, %v366_v51, %v368_v57  ;;  %v785_v60 = vmul.u32.u64.low %v370_v23, %v365_v56  ;;  %v786_v61 = vmul.u32.u64.high %v370_v23, %v365_v56, %v785_v60  ;;  %v377_v3 = vmul.u32 %v370_v23, %v361_v0 }
  0xc0   : > { %v788_v62 = vmul.u32.u64.low %v370_v23, %v369_v59  ;;  %v789_v63 = vmul.u32.u64.high %v370_v23, %v369_v59, %v788_v62  ;;  %v281_v40 = vshll.u32 %v280_v58, 30  ;;  %v274_v15 = vadd.s32 %v774_v17, %v771_v16 }
  0xc1   : > { %v380_v2 = vadd.s32 1, %v786_v61  ;;  %v304_v37 = vsub.s32 4, %v280_v58  ;;  %vm805_vm1 = vcmp.le.f32.partialorder %v322_v33, 0.7853982  ;;  %vm310_vm5 = vweird.f32 %v747_v19 }
  0xc2   : > { %v282_v1 = vsub.s32 %v278_v44, %v281_v40  ;;  %vm379_vm11 = vc.u32 %v789_v63, %v785_v60  ;;  %v378_v16 = vadd.s32 %v785_v60, %v789_v63  ;;  %vm414_vm9 = vweird.f32 %v751_v26 }
  0xc3   : > { %v381_v5 = vsel %vm379_vm11, %v380_v2, %v786_v61  ;;  %v305_v46 = vsel %vm220_vm14, %v304_v37, %v280_v58 }
  0xc4   : > { %v284_v4 = vsub.s32 0, %v282_v1  ;;  %v382_v6 = vadd.s32 %v381_v5, %v377_v3  ;;  %v307_v51 = vsel %vm219_vm15, 0, %v305_v46 }
  0xc5   : > { %v311_v54 = vadd.s32 3, %v307_v51 }
  0xc6   : > { %v513_v7 = vmin.u32 %v284_v4, %v282_v1  ;;  %v383_v8 = vadd.s32 536870912, %v382_v6 }
  0xc7   : > { %v312_v22 = vand.u32 3, %v311_v54 }
  0xc8   : > { %v286_v9 = vclz %v513_v7  ;;  %v384_v10 = vshrl.u32 %v383_v8, 30 }
  0xc9   : > { %vm317_vm2 = vcmp.eq.s32.totalorder %v312_v22, 2  ;;  %vm314_vm3 = vcmp.eq.s32.totalorder %v312_v22, 0  ;;  %vm313_vm4 = vcmp.lt.s32.totalorder %v312_v22, 2 }
  0xca   : > { %v514_v11 = vadd.s32 4294967294, %v286_v9  ;;  %v385_v12 = vshll.u32 %v384_v10, 30  ;;  %v408_v56 = vsub.s32 4, %v384_v10 }
  0xcc   : > { %vm515_vm12 = vcmp.lt.s32.totalorder %v514_v11, 0  ;;  %v386_v14 = vsub.s32 %v382_v6, %v385_v12  ;;  %v409_v60 = vsel %vm324_vm0, %v408_v56, %v384_v10 }
  0xcd   : > { %v289_v13 = vsel %vm515_vm12, 0, %v514_v11  ;;  %v411_v0 = vsel %vm805_vm1, 0, %v409_v60 }
  0xce   : > { %v290_v18 = vsub.s32 32, %v289_v13  ;;  %v294_v20 = vsub.s32 4294967266, %v289_v13  ;;  %v388_v21 = vsub.s32 0, %v386_v14  ;;  %v291_v23 = vshll.u32 %v282_v1, %v289_v13 }
  0xcf   : > { %v415_v3 = vadd.s32 3, %v411_v0 }
  0xd0   : > { %v292_v24 = vshrl.u32 %v274_v15, %v290_v18  ;;  %v295_v25 = vadd.s32 127, %v294_v20  ;;  %v517_v27 = vmin.u32 %v388_v21, %v386_v14 }
  0xd1   : > { %v416_v6 = vand.u32 3, %v415_v3 }
  0xd2   : > { %v293_v28 = vor.u32 %v292_v24, %v291_v23  ;;  %v296_v29 = vshll.u32 %v295_v25, 23  ;;  %v390_v30 = vclz %v517_v27 }
  0xd3   : > { %vm421_vm6 = vcmp.eq.s32.totalorder %v416_v6, 2  ;;  %vm418_vm7 = vcmp.eq.s32.totalorder %v416_v6, 0  ;;  %vm417_vm8 = vcmp.lt.s32.totalorder %v416_v6, 2 }
  0xd4   : > { %v297_v31 = vor.u32 4788187, %v296_v29  ;;  %v518_v32 = vadd.s32 4294967294, %v390_v30  ;;  %v300_v35 = vcvt.s32.f32 %v293_v28 }
  0xd6   : > { %v298_v34 = vand.u32 2147483647, %v297_v31  ;;  %vm519_vm13 = vcmp.lt.s32.totalorder %v518_v32, 0 }
  0xd7   : > { %v393_v39 = vsel %vm519_vm13, 0, %v518_v32 }
  0xd8   : > { %v301_v36 = vmul.f32 %v300_v35, %v298_v34  ;;  %v394_v17 = vsub.s32 32, %v393_v39  ;;  %v398_v41 = vsub.s32 4294967266, %v393_v39  ;;  %v395_v38 = vshll.u32 %v386_v14, %v393_v39 }
  0xda   : > { %v302_v42 = vxor.u32 2147483648, %v301_v36  ;;  %v396_v43 = vshrl.u32 %v378_v16, %v394_v17  ;;  %v399_v44 = vadd.s32 127, %v398_v41 }
  0xdc   : > { %v303_v45 = vsel %vm220_vm14, %v302_v42, %v301_v36  ;;  %v397_v48 = vor.u32 %v396_v43, %v395_v38  ;;  %v400_v49 = vshll.u32 %v399_v44, 23 }
  0xdd   : > { %v306_v47 = vsel %vm219_vm15, %v747_v19, %v303_v45 }
  0xde   : > { %586 = vcosq.f32 %v306_v47  ;;  %v401_v52 = vor.u32 4788187, %v400_v49  ;;  %v404_v53 = vcvt.s32.f32 %v397_v48 }
  0xdf   : > { %588 = vsinq.f32 %v306_v47 }
  0xe0   : > { %v402_v50 = vand.u32 2147483647, %v401_v52 }
  0xe2   : > { %v405_v55 = vmul.f32 %v404_v53, %v402_v50 }
  0xe4   : > { %v406_v57 = vxor.u32 2147483648, %v405_v55 }
  0xe6   : > { %v407_v59 = vsel %vm324_vm0, %v406_v57, %v405_v55 }
  0xe7   : > { %v410_v62 = vsel %vm805_vm1, %v751_v26, %v407_v59 }
  0xe8   : > { %v587_v61 = vpop.eup %586  ;;  %590 = vcosq.f32 %v410_v62 }
  0xe9   : > { %v589_v63 = vpop.eup %588  ;;  %v318_v40 = vxor.u32 2147483648, %v587_v61  ;;  %592 = vsinq.f32 %v410_v62 }
  0xea   : > { %v315_v33 = vxor.u32 2147483648, %v589_v63 }
  0xeb   : > { %v319_v1 = vsel %vm317_vm2, %v318_v40, %v589_v63 }
  0xec   : > { %v316_v2 = vsel %vm314_vm3, %v587_v61, %v315_v33 }
  0xed   : > { %v320_v4 = vsel %vm313_vm4, %v316_v2, %v319_v1 }
  0xee   : > { %v321_v5 = vsel %vm310_vm5, nan, %v320_v4 }
  0xef   : > { %426 = vst [vmem:[%s164_s8] sm:$0xff] %v321_v5 }
  0xf2   : > { %v591_v7 = vpop.eup %590 }
  0xf3   : > { %v593_v8 = vpop.eup %592  ;;  %v422_v9 = vxor.u32 2147483648, %v591_v7 }
  0xf4   : > { %v419_v10 = vxor.u32 2147483648, %v593_v8 }
  0xf5   : > { %v423_v11 = vsel %vm421_vm6, %v422_v9, %v593_v8 }
  0xf6   : > { %v420_v12 = vsel %vm418_vm7, %v591_v7, %v419_v10 }
  0xf7   : > { %v424_v19 = vsel %vm417_vm8, %v420_v12, %v423_v11 }
  0xf8   : > { %v425_v13 = vsel %vm414_vm9, nan, %v424_v19 }
  0xf9   : > { %427 = vst [vmem:[%s164_s8 + $0x8] sm:$0xff] %v425_v13 }
  0xfa   : > { %607 = shalt.err (!%p604_p3)
}
  0xfb   : > { %s608_s27 = scalar_lea.hbm %s821_s19, 256  ;;  %s612_s30 = scalar_lea.hbm %s872_s3, 2048 }
  0xfc   : > { %p609_p4 = scmp.ne.s32.totalorder %s821_s19, %s608_s27  ;;  %p613_p9 = scmp.lt.u32.totalorder %s821_s19, %s872_s3 }
  0xfd   : > { %p614_p10 = scmp.lt.u32.totalorder %s612_s30, %s608_s27  ;;  %p616_p12 = scmp.lt.u32.totalorder %s608_s27, %s821_s19 }
  0xfe   : > { %p610_p7 = pnand %p609_p4, %p727_p5 }
  0xff   : > { %p615_p11 = por %p614_p10, %p613_p9 }
 0x100   : > { %p611_p8 = pneg %p610_p7 }
 0x101   : > { %p617_p13 = por %p616_p12, %p615_p11 }
 0x103   : > { %p618_p0 = pnand %p617_p13, %p611_p8 }
 0x105   : > { %621 = shalt.err (!%p618_p0)
}
 0x106   : > { %s667_s6 = smov 128   ;;  %s668_s7 = smov 8  }
 0x107   : > { %534 = dma.vmem_to_hbm [thread:$0]  (%p727_p5), %s823_s10, 256, %s821_s19, %s828_s16, %s667_s6, %s667_s6, %s668_s7  }
 0x108 PF: > { %p540_p1 = scmp.ge.s32.totalorder %s656_s15, 2  ;;  %s457_s8 = sand.u32 1, %s644_s12  }
 0x109   : > { %s458_s9 = scalar_lea.sflag [#allocation3], %s457_s8 }
 0x10a   : > { %p537_p2 = pnand %p540_p1, %p731_p6 }
 0x10c   : > { %639 = dma.done.wait (!%p537_p2), %s458_s9, 256  }
 0x10d   : > { %641 = vsyncadd (!%p537_p2), %s458_s9, 4294967040  ;;  %p13_p3 = scmp.ge.s32.totalorder %s714_s18, 10   ;;  %s877_s12 = smov %s648_s13 }
 0x10e   : > { %s878_s13 = smov %s652_s14  ;;  %s879_s14 = smov %s725_s21 }
 0x10f   : > { %s880_s15 = smov %s714_s18  ;;  %15 = sbr.rel (!%p13_p3) target bundleno = 3 (0x3), region = 67 }
 0x116   :  { %463 = vsyncpa [#allocation3], 1 }
 0x117   :  { %465 = vsyncpa [#allocation3 + $0x1], 1 }

</bundles_post_ra>
